<compile_context>
chip_gen: v7x
topology: tpu7x:2x2x1
jax: 0.10.0
libtpu: 0.0.40
codegen_flags: <defaults>
</compile_context>

<pallas_src>
import functools
import math

import jax
import jax.numpy as jnp
from jax import lax
from jax.experimental import pallas as pl
from jax.experimental.pallas import tpu as pltpu

BN_EPS = 1e-5


def cnn1d_fused_kernel(x_ref, w_ref, b_ref, gamma_ref, beta_ref, out_ref, *,
                       l_out, stride):
    """Fused Conv1d -> BatchNorm1d(batch stats) -> ReLU -> attention -> mean.

    x_ref:     (B, L, C_in)      input, C_in on lanes
    w_ref:     (K, C_in, C_out)  conv weight, C_out on lanes
    b_ref/gamma_ref/beta_ref: (1, C_out) parameter rows
    out_ref:   (B, C_out)        final result slab (single store)
    """
    B, _, c_in = x_ref.shape
    k_size = w_ref.shape[0]
    c_out = w_ref.shape[2]

    # ---- Conv1d for all batches: K MXU matmuls over batched shifted windows ----
    x = x_ref[...]                                          # (B, L, C_in)
    acc = None
    for k in range(k_size):                                 # K is tiny -> static unroll
        # in-kernel im2col: k-th shifted window, all batches at once
        xs = x[:, k:k + (l_out - 1) * stride + 1:stride, :]  # (B, L_out, C_in)
        xs = xs.reshape(B * l_out, c_in)
        part = jnp.dot(xs, w_ref[k], preferred_element_type=jnp.float32)
        acc = part if acc is None else acc + part
    conv = acc + b_ref[...]                                 # (B*L_out, C_out)

    # ---- BatchNorm1d training-mode batch stats (two-pass variance) + ReLU ----
    n = B * l_out
    mean = jnp.sum(conv, axis=0, keepdims=True) * (1.0 / n)          # (1, C_out)
    cen = conv - mean
    var = jnp.sum(cen * cen, axis=0, keepdims=True) * (1.0 / n)      # biased var
    y = jnp.maximum(gamma_ref[...] * cen * lax.rsqrt(var + BN_EPS) + beta_ref[...],
                    0.0)                                             # (B*L_out, C_out)
    y3 = y.reshape(B, l_out, c_out)

    # ---- attention(q=k=v=y^T) with the trailing mean over L folded in ----
    inv_sqrt_l = 1.0 / math.sqrt(l_out)
    rows = []
    for bidx in range(B):                                   # B small -> static unroll
        yb = y3[bidx]                                       # (L_out, C_out)
        # Gram matrix S[c,d] = sum_l yb[l,c]*yb[l,d] / sqrt(L_out): contract the
        # sublane axis directly (no explicit transpose).  S is exactly symmetric.
        s = lax.dot_general(yb, yb, (((0,), (0,)), ((), ())),
                            preferred_element_type=jnp.float32) * inv_sqrt_l
        # Symmetry lets every softmax row statistic be a lane-dense (1, C_out)
        # column reduction; the (C_out, L_out) attention output is never formed.
        m_row = jnp.max(s, axis=0, keepdims=True)            # (1, C_out)
        e_t = jnp.exp(s - m_row)                             # e_t[d,c] = exp(S[c,d]-m[c])
        den = jnp.sum(e_t, axis=0, keepdims=True)            # (1, C_out)
        ybar = jnp.sum(yb, axis=0, keepdims=True) * (1.0 / l_out)
        num = jnp.dot(ybar, e_t, preferred_element_type=jnp.float32)  # (1, C_out)
        rows.append(num / den)

    # Single store of the whole (B, C_out) result slab.
    out_ref[...] = jnp.concatenate(rows, axis=0).astype(out_ref.dtype)


def cnn1d_forward(x, w, b, gamma, beta, *, stride=1):
    """x: (B, C_in, L) f32; w: (C_out, C_in, K); b/gamma/beta: (C_out,) -> (B, C_out)."""
    B, c_in, L = x.shape
    c_out, _, k_size = w.shape
    l_out = (L - k_size) // stride + 1

    # Layout plumbing only: channels on the lane (last) axis everywhere.
    x_t = jnp.transpose(x, (0, 2, 1))                # (B, L, C_in)
    w_t = jnp.transpose(w, (2, 1, 0))                # (K, C_in, C_out)
    b_row = b.reshape(1, c_out)
    g_row = gamma.reshape(1, c_out)
    be_row = beta.reshape(1, c_out)

    return pl.pallas_call(
        functools.partial(cnn1d_fused_kernel, l_out=l_out, stride=stride),
        grid=(1,),
        in_specs=[
            pl.BlockSpec((B, L, c_in), lambda i: (0, 0, 0)),
            pl.BlockSpec((k_size, c_in, c_out), lambda i: (0, 0, 0)),
            pl.BlockSpec((1, c_out), lambda i: (0, 0)),
            pl.BlockSpec((1, c_out), lambda i: (0, 0)),
            pl.BlockSpec((1, c_out), lambda i: (0, 0)),
        ],
        out_specs=pl.BlockSpec((B, c_out), lambda i: (0, 0)),
        out_shape=jax.ShapeDtypeStruct((B, c_out), jnp.float32),
        compiler_params=pltpu.CompilerParams(
            dimension_semantics=("arbitrary",),
        ),
    )(x_t, w_t, b_row, g_row, be_row)


def ref_forward(x, w, b, gamma, beta, *, stride=1):
    """Pure-JAX reference mirroring the PyTorch forward (training-mode BN)."""
    conv = lax.conv_general_dilated(
        x, w, window_strides=(stride,), padding="VALID",
        dimension_numbers=("NCH", "OIH", "NCH")) + b[None, :, None]
    mean = conv.mean(axis=(0, 2), keepdims=True)
    var = ((conv - mean) ** 2).mean(axis=(0, 2), keepdims=True)
    y = gamma[None, :, None] * (conv - mean) / jnp.sqrt(var + BN_EPS) + beta[None, :, None]
    y = jnp.maximum(y, 0.0)
    l_out = y.shape[-1]
    scores = jnp.einsum("bcl,bdl->bcd", y, y) / jnp.sqrt(jnp.float32(l_out))
    p = jax.nn.softmax(scores, axis=-1)
    att = jnp.einsum("bcd,bdl->bcl", p, y)
    return att.mean(axis=-1)                         # == transpose(1,2).mean(dim=1)


if __name__ == "__main__":
    # Small shapes consistent with the module: Conv1d input (B, C_in, L)
    B, C_IN, C_OUT, L, K, STRIDE = 2, 4, 8, 16, 3, 1

    key = jax.random.PRNGKey(0)
    kx, kw, kb, kg, kbe = jax.random.split(key, 5)

    x = jax.random.normal(kx, (B, C_IN, L), dtype=jnp.float32)

    # Deterministic synthetic parameters (shapes from nn.Conv1d / nn.BatchNorm1d)
    fan_in = C_IN * K
    w = jax.random.uniform(kw, (C_OUT, C_IN, K), jnp.float32,
                           -1.0 / math.sqrt(fan_in), 1.0 / math.sqrt(fan_in))
    b = jax.random.uniform(kb, (C_OUT,), jnp.float32,
                           -1.0 / math.sqrt(fan_in), 1.0 / math.sqrt(fan_in))
    gamma = 1.0 + 0.1 * jax.random.normal(kg, (C_OUT,), jnp.float32)
    beta = 0.1 * jax.random.normal(kbe, (C_OUT,), jnp.float32)

    fwd = jax.jit(functools.partial(cnn1d_forward, stride=STRIDE))
    out = jax.block_until_ready(fwd(x, w, b, gamma, beta))

    ref = jax.block_until_ready(ref_forward(x, w, b, gamma, beta, stride=STRIDE))
    assert out.shape == (B, C_OUT)
    assert jnp.allclose(out, ref, rtol=1e-3, atol=1e-3), (out, ref)

    print("KERNEL_OK")
</pallas_src>

<mosaic_0001>
module attributes {stable_mosaic.version = 11 : i64} {
  func.func @cnn1d_fused_kernel(%arg0: i32, %arg1: memref<2x16x4xf32, #tpu.memory_space<vmem>>, %arg2: memref<3x4x8xf32, #tpu.memory_space<vmem>>, %arg3: memref<1x8xf32, #tpu.memory_space<vmem>>, %arg4: memref<1x8xf32, #tpu.memory_space<vmem>>, %arg5: memref<1x8xf32, #tpu.memory_space<vmem>>, %arg6: memref<2x8xf32, #tpu.memory_space<vmem>>) attributes {dimension_semantics = [#tpu.dimension_semantics<arbitrary>], iteration_bounds = array<i64: 1>, scalar_prefetch = 0 : i64, scratch_operands = 0 : i64, tpu.core_type = #tpu.core_type<tc>, window_params = [{pipeline_mode = #tpu.pipeline_mode<synchronous>, transform_indices = @transform_0, window_bounds = array<i64: 2, 16, 4>}, {pipeline_mode = #tpu.pipeline_mode<synchronous>, transform_indices = @transform_1, window_bounds = array<i64: 3, 4, 8>}, {pipeline_mode = #tpu.pipeline_mode<synchronous>, transform_indices = @transform_2, window_bounds = array<i64: 1, 8>}, {pipeline_mode = #tpu.pipeline_mode<synchronous>, transform_indices = @transform_3, window_bounds = array<i64: 1, 8>}, {pipeline_mode = #tpu.pipeline_mode<synchronous>, transform_indices = @transform_4, window_bounds = array<i64: 1, 8>}, {pipeline_mode = #tpu.pipeline_mode<synchronous>, transform_indices = @transform_5, window_bounds = array<i64: 2, 8>}]} {
    %c0 = arith.constant 0 : index
    %c0_0 = arith.constant 0 : index
    %c0_1 = arith.constant 0 : index
    %0 = vector.load %arg1[%c0, %c0_0, %c0_1] : memref<2x16x4xf32, #tpu.memory_space<vmem>>, vector<2x16x4xf32>
    %1 = vector.extract_strided_slice %0 {offsets = [0, 0, 0], sizes = [2, 14, 4], strides = [1, 1, 1]} : vector<2x16x4xf32> to vector<2x14x4xf32>
    %2 = vector.shape_cast %1 : vector<2x14x4xf32> to vector<28x4xf32>
    %c0_2 = arith.constant 0 : index
    %c0_3 = arith.constant 0 : index
    %c0_4 = arith.constant 0 : index
    %3 = vector.load %arg2[%c0_2, %c0_3, %c0_4] : memref<3x4x8xf32, #tpu.memory_space<vmem>>, vector<1x4x8xf32>
    %4 = vector.shape_cast %3 : vector<1x4x8xf32> to vector<4x8xf32>
    %cst = arith.constant dense<0.000000e+00> : vector<28x8xf32>
    %5 = tpu.matmul %2, %4, %cst {dimension_numbers = #tpu.dot_dimension_numbers<[1], [0], [0], [1], [0, 0, 1, 1], [], []>} : vector<28x4xf32>, vector<4x8xf32>, vector<28x8xf32> -> vector<28x8xf32>
    %6 = vector.extract_strided_slice %0 {offsets = [0, 1, 0], sizes = [2, 14, 4], strides = [1, 1, 1]} : vector<2x16x4xf32> to vector<2x14x4xf32>
    %7 = vector.shape_cast %6 : vector<2x14x4xf32> to vector<28x4xf32>
    %c1 = arith.constant 1 : index
    %c0_5 = arith.constant 0 : index
    %c0_6 = arith.constant 0 : index
    %8 = vector.load %arg2[%c1, %c0_5, %c0_6] : memref<3x4x8xf32, #tpu.memory_space<vmem>>, vector<1x4x8xf32>
    %9 = vector.shape_cast %8 : vector<1x4x8xf32> to vector<4x8xf32>
    %cst_7 = arith.constant dense<0.000000e+00> : vector<28x8xf32>
    %10 = tpu.matmul %7, %9, %cst_7 {dimension_numbers = #tpu.dot_dimension_numbers<[1], [0], [0], [1], [0, 0, 1, 1], [], []>} : vector<28x4xf32>, vector<4x8xf32>, vector<28x8xf32> -> vector<28x8xf32>
    %11 = arith.addf %5, %10 : vector<28x8xf32>
    %12 = vector.extract_strided_slice %0 {offsets = [0, 2, 0], sizes = [2, 14, 4], strides = [1, 1, 1]} : vector<2x16x4xf32> to vector<2x14x4xf32>
    %13 = vector.shape_cast %12 : vector<2x14x4xf32> to vector<28x4xf32>
    %c2 = arith.constant 2 : index
    %c0_8 = arith.constant 0 : index
    %c0_9 = arith.constant 0 : index
    %14 = vector.load %arg2[%c2, %c0_8, %c0_9] : memref<3x4x8xf32, #tpu.memory_space<vmem>>, vector<1x4x8xf32>
    %15 = vector.shape_cast %14 : vector<1x4x8xf32> to vector<4x8xf32>
    %cst_10 = arith.constant dense<0.000000e+00> : vector<28x8xf32>
    %16 = tpu.matmul %13, %15, %cst_10 {dimension_numbers = #tpu.dot_dimension_numbers<[1], [0], [0], [1], [0, 0, 1, 1], [], []>} : vector<28x4xf32>, vector<4x8xf32>, vector<28x8xf32> -> vector<28x8xf32>
    %17 = arith.addf %11, %16 : vector<28x8xf32>
    %c0_11 = arith.constant 0 : index
    %c0_12 = arith.constant 0 : index
    %18 = vector.load %arg3[%c0_11, %c0_12] : memref<1x8xf32, #tpu.memory_space<vmem>>, vector<1x8xf32>
    %19 = vector.broadcast %18 : vector<1x8xf32> to vector<28x8xf32>
    %20 = arith.addf %17, %19 : vector<28x8xf32>
    %cst_13 = arith.constant dense<0.000000e+00> : vector<8xf32>
    %21 = vector.multi_reduction <add>, %20, %cst_13 [0] : vector<28x8xf32> to vector<8xf32>
    %22 = vector.shape_cast %21 : vector<8xf32> to vector<1x8xf32>
    %cst_14 = arith.constant 0.0357142873 : f32
    %23 = vector.broadcast %cst_14 : f32 to vector<1x8xf32>
    %24 = arith.mulf %22, %23 : vector<1x8xf32>
    %25 = vector.broadcast %24 : vector<1x8xf32> to vector<28x8xf32>
    %26 = arith.subf %20, %25 : vector<28x8xf32>
    %27 = arith.mulf %26, %26 : vector<28x8xf32>
    %cst_15 = arith.constant dense<0.000000e+00> : vector<8xf32>
    %28 = vector.multi_reduction <add>, %27, %cst_15 [0] : vector<28x8xf32> to vector<8xf32>
    %29 = vector.shape_cast %28 : vector<8xf32> to vector<1x8xf32>
    %cst_16 = arith.constant 0.0357142873 : f32
    %30 = vector.broadcast %cst_16 : f32 to vector<1x8xf32>
    %31 = arith.mulf %29, %30 : vector<1x8xf32>
    %c0_17 = arith.constant 0 : index
    %c0_18 = arith.constant 0 : index
    %32 = vector.load %arg4[%c0_17, %c0_18] : memref<1x8xf32, #tpu.memory_space<vmem>>, vector<1x8xf32>
    %33 = vector.broadcast %32 : vector<1x8xf32> to vector<28x8xf32>
    %34 = arith.mulf %33, %26 : vector<28x8xf32>
    %cst_19 = arith.constant 9.99999974E-6 : f32
    %35 = vector.broadcast %cst_19 : f32 to vector<1x8xf32>
    %36 = arith.addf %31, %35 : vector<1x8xf32>
    %37 = math.rsqrt %36 : vector<1x8xf32>
    %38 = vector.broadcast %37 : vector<1x8xf32> to vector<28x8xf32>
    %39 = arith.mulf %34, %38 : vector<28x8xf32>
    %c0_20 = arith.constant 0 : index
    %c0_21 = arith.constant 0 : index
    %40 = vector.load %arg5[%c0_20, %c0_21] : memref<1x8xf32, #tpu.memory_space<vmem>>, vector<1x8xf32>
    %41 = vector.broadcast %40 : vector<1x8xf32> to vector<28x8xf32>
    %42 = arith.addf %39, %41 : vector<28x8xf32>
    %cst_22 = arith.constant 0.000000e+00 : f32
    %43 = vector.broadcast %cst_22 : f32 to vector<28x8xf32>
    %44 = arith.maximumf %42, %43 : vector<28x8xf32>
    %45 = vector.shape_cast %44 : vector<28x8xf32> to vector<2x14x8xf32>
    %46 = vector.extract_strided_slice %45 {offsets = [0, 0, 0], sizes = [1, 14, 8], strides = [1, 1, 1]} : vector<2x14x8xf32> to vector<1x14x8xf32>
    %47 = vector.shape_cast %46 : vector<1x14x8xf32> to vector<14x8xf32>
    %cst_23 = arith.constant dense<0.000000e+00> : vector<8x8xf32>
    %48 = tpu.matmul %47, %47, %cst_23 {dimension_numbers = #tpu.dot_dimension_numbers<[0], [0], [1], [1], [0, 1, 1, 1], [], []>} : vector<14x8xf32>, vector<14x8xf32>, vector<8x8xf32> -> vector<8x8xf32>
    %cst_24 = arith.constant 0.267261237 : f32
    %49 = vector.broadcast %cst_24 : f32 to vector<8x8xf32>
    %50 = arith.mulf %48, %49 : vector<8x8xf32>
    %cst_25 = arith.constant dense<0xFF800000> : vector<8xf32>
    %51 = vector.multi_reduction <maximumf>, %50, %cst_25 [0] : vector<8x8xf32> to vector<8xf32>
    %52 = vector.shape_cast %51 : vector<8xf32> to vector<1x8xf32>
    %53 = vector.broadcast %52 : vector<1x8xf32> to vector<8x8xf32>
    %54 = arith.subf %50, %53 : vector<8x8xf32>
    %55 = math.exp %54 : vector<8x8xf32>
    %cst_26 = arith.constant dense<0.000000e+00> : vector<8xf32>
    %56 = vector.multi_reduction <add>, %55, %cst_26 [0] : vector<8x8xf32> to vector<8xf32>
    %57 = vector.shape_cast %56 : vector<8xf32> to vector<1x8xf32>
    %cst_27 = arith.constant dense<0.000000e+00> : vector<8xf32>
    %58 = vector.multi_reduction <add>, %47, %cst_27 [0] : vector<14x8xf32> to vector<8xf32>
    %59 = vector.shape_cast %58 : vector<8xf32> to vector<1x8xf32>
    %cst_28 = arith.constant 0.0714285746 : f32
    %60 = vector.broadcast %cst_28 : f32 to vector<1x8xf32>
    %61 = arith.mulf %59, %60 : vector<1x8xf32>
    %cst_29 = arith.constant dense<0.000000e+00> : vector<1x8xf32>
    %62 = tpu.matmul %61, %55, %cst_29 {dimension_numbers = #tpu.dot_dimension_numbers<[1], [0], [0], [1], [0, 0, 1, 1], [], []>} : vector<1x8xf32>, vector<8x8xf32>, vector<1x8xf32> -> vector<1x8xf32>
    %63 = arith.divf %62, %57 : vector<1x8xf32>
    %64 = vector.extract_strided_slice %45 {offsets = [1, 0, 0], sizes = [1, 14, 8], strides = [1, 1, 1]} : vector<2x14x8xf32> to vector<1x14x8xf32>
    %65 = vector.shape_cast %64 : vector<1x14x8xf32> to vector<14x8xf32>
    %cst_30 = arith.constant dense<0.000000e+00> : vector<8x8xf32>
    %66 = tpu.matmul %65, %65, %cst_30 {dimension_numbers = #tpu.dot_dimension_numbers<[0], [0], [1], [1], [0, 1, 1, 1], [], []>} : vector<14x8xf32>, vector<14x8xf32>, vector<8x8xf32> -> vector<8x8xf32>
    %cst_31 = arith.constant 0.267261237 : f32
    %67 = vector.broadcast %cst_31 : f32 to vector<8x8xf32>
    %68 = arith.mulf %66, %67 : vector<8x8xf32>
    %cst_32 = arith.constant dense<0xFF800000> : vector<8xf32>
    %69 = vector.multi_reduction <maximumf>, %68, %cst_32 [0] : vector<8x8xf32> to vector<8xf32>
    %70 = vector.shape_cast %69 : vector<8xf32> to vector<1x8xf32>
    %71 = vector.broadcast %70 : vector<1x8xf32> to vector<8x8xf32>
    %72 = arith.subf %68, %71 : vector<8x8xf32>
    %73 = math.exp %72 : vector<8x8xf32>
    %cst_33 = arith.constant dense<0.000000e+00> : vector<8xf32>
    %74 = vector.multi_reduction <add>, %73, %cst_33 [0] : vector<8x8xf32> to vector<8xf32>
    %75 = vector.shape_cast %74 : vector<8xf32> to vector<1x8xf32>
    %cst_34 = arith.constant dense<0.000000e+00> : vector<8xf32>
    %76 = vector.multi_reduction <add>, %65, %cst_34 [0] : vector<14x8xf32> to vector<8xf32>
    %77 = vector.shape_cast %76 : vector<8xf32> to vector<1x8xf32>
    %cst_35 = arith.constant 0.0714285746 : f32
    %78 = vector.broadcast %cst_35 : f32 to vector<1x8xf32>
    %79 = arith.mulf %77, %78 : vector<1x8xf32>
    %cst_36 = arith.constant dense<0.000000e+00> : vector<1x8xf32>
    %80 = tpu.matmul %79, %73, %cst_36 {dimension_numbers = #tpu.dot_dimension_numbers<[1], [0], [0], [1], [0, 0, 1, 1], [], []>} : vector<1x8xf32>, vector<8x8xf32>, vector<1x8xf32> -> vector<1x8xf32>
    %81 = arith.divf %80, %75 : vector<1x8xf32>
    %82 = tpu.concatenate %63, %81 in 0 : vector<1x8xf32>, vector<1x8xf32> -> vector<2x8xf32>
    %c0_37 = arith.constant 0 : index
    %c0_38 = arith.constant 0 : index
    %83 = vector.load %arg6[%c0_37, %c0_38] : memref<2x8xf32, #tpu.memory_space<vmem>>, vector<2x8xf32>
    tpu.vector_store %arg6[%c0_37, %c0_38], %82 {strides = array<i32>} : memref<2x8xf32, #tpu.memory_space<vmem>>, vector<2x8xf32>,
    return
  }
  func.func @transform_0(%arg0: i32) -> (i32, i32, i32) {
    %c0_i32 = arith.constant 0 : i32
    %c0_i32_0 = arith.constant 0 : i32
    %c0_i32_1 = arith.constant 0 : i32
    %c0_i32_2 = arith.constant 0 : i32
    return %c0_i32, %c0_i32_0, %c0_i32_1 : i32, i32, i32
  }
  func.func @transform_1(%arg0: i32) -> (i32, i32, i32) {
    %c0_i32 = arith.constant 0 : i32
    %c0_i32_0 = arith.constant 0 : i32
    %c0_i32_1 = arith.constant 0 : i32
    %c0_i32_2 = arith.constant 0 : i32
    return %c0_i32, %c0_i32_0, %c0_i32_1 : i32, i32, i32
  }
  func.func @transform_2(%arg0: i32) -> (i32, i32) {
    %c0_i32 = arith.constant 0 : i32
    %c0_i32_0 = arith.constant 0 : i32
    %c0_i32_1 = arith.constant 0 : i32
    return %c0_i32, %c0_i32_0 : i32, i32
  }
  func.func @transform_3(%arg0: i32) -> (i32, i32) {
    %c0_i32 = arith.constant 0 : i32
    %c0_i32_0 = arith.constant 0 : i32
    %c0_i32_1 = arith.constant 0 : i32
    return %c0_i32, %c0_i32_0 : i32, i32
  }
  func.func @transform_4(%arg0: i32) -> (i32, i32) {
    %c0_i32 = arith.constant 0 : i32
    %c0_i32_0 = arith.constant 0 : i32
    %c0_i32_1 = arith.constant 0 : i32
    return %c0_i32, %c0_i32_0 : i32, i32
  }
  func.func @transform_5(%arg0: i32) -> (i32, i32) {
    %c0_i32 = arith.constant 0 : i32
    %c0_i32_0 = arith.constant 0 : i32
    %c0_i32_1 = arith.constant 0 : i32
    return %c0_i32, %c0_i32_0 : i32, i32
  }
}

</mosaic_0001>

<bundles_post_ra>
// kernel: cnn1d_forward.1
= control target key start
LH: loop header
LB: loop body
LE: loop exit
PB: predicated region body
PF: predicated region fallthrough
CT: control target
= control target key end

     0   :  { %vm219_vm0 = vcmask 1043456   ;;  %v33_v3 = vlaneseq  ;;  %vm98_vm1 = vcmask 1040384   ;;  %vm99_vm2 = vcmask 1042434   ;;  %s1733_s0 = inlined_call_operand.vmem [shape: f32[2,16,4], index: 0, kind: input, shape index: {}]   ;;  %s1734_s1 = inlined_call_operand.vmem [shape: f32[3,4,8], index: 1, kind: input, shape index: {}]   ;;  %s1735_s2 = inlined_call_operand.vmem [shape: f32[1,8], index: 2, kind: input, shape index: {}]   ;;  %s1736_s3 = inlined_call_operand.vmem [shape: f32[1,8], index: 3, kind: input, shape index: {}]   ;;  %s1737_s4 = inlined_call_operand.vmem [shape: f32[1,8], index: 4, kind: input, shape index: {}]   ;;  %s1738_s5 = inlined_call_operand.hbm [shape: f32[2,8], index: 5, kind: output, shape index: {}]  }
   0x1   :  { %v1283_v0 = vld [vmem:[%s1734_s1 + $0x4] sm:$0xf]  ;;  %v22_v2 = vld [vmem:[%s1733_s0 + $0x8] sm:$0xff]  ;;  %v1494_v4 = vld [vmem:[%s1734_s1] sm:$0xf]  ;;  %vm101_vm4 = vcmask 1044484  }
   0x2   :  { %v21_v1 = vld [vmem:[%s1733_s0] sm:$0xff]  ;;  %1335 = vmatprep.subr.msk.mxu0 %vm219_vm0, %v1283_v0  ;;  %1391 = vmatprep.subr.msk.mxu1 %vm219_vm0, %v1283_v0  ;;  %v1445_v5 = vmov 1983009808   ;;  %v34_v7 = vshrl.u32 %v33_v3, 7  ;;  %v24_v8 = vld [vmem:[%s1733_s0 + $0x18] sm:$0xff]  ;;  %v46_v11 = vcombine.high %v22_v2, %v22_v2  ;;  %vm100_vm3 = vmor %vm98_vm1, %vm99_vm2 }
   0x3   :  { %1336 = vmatpush3.msk.msra.mxu0 %vm219_vm0, %v1283_v0  ;;  %v31_v6 = vunpack.c.l.s4 %v1445_v5  ;;  %1392 = vmatpush3.msk.msra.mxu1 %vm219_vm0, %v1283_v0  ;;  %v29_v9 = vcombine.high %v21_v1, %v21_v1  ;;  %v23_v12 = vld [vmem:[%s1733_s0 + $0x10] sm:$0xff]  ;;  %v79_v14 = vcombine.high %v24_v8, %v24_v8 }
   0x4   :  { %1343 = vmatprep.subr.msk.mxu0 %vm219_vm0, %v1494_v4  ;;  %v62_v13 = vcombine.high %v23_v12, %v23_v12 }
   0x5   :  { %v32_v10 = vunpack.c.0.s8 %v31_v6 }
   0x6   :  { %10 = vsyncpa [#allocation3], 0  ;;  %vm103_vm5 = vcmask 1046534   ;;  %vm210_vm8 = vcmask 31744   ;;  %vm1447_vm9 = vmmov 0   ;;  %vm635_vm10 = vcmask 64512  }
   0x7   :  { %v1508_v15 = vsub.s32 %v32_v10, %v34_v7  ;;  %vm102_vm6 = vmor %vm100_vm3, %vm101_vm4  ;;  %vm641_vm11 = vcmask 60416   ;;  %vm931_vm12 = vcmask 62464   ;;  %vm839_vm13 = vcmask 1045504  }
   0x8   :  { %vm1539_vm7 = vmor %vm102_vm6, %vm103_vm5  ;;  %vm1449_vm14 = vmmov 1   ;;  %vm1265_vm2 = vcmask 58368  }
   0x9   :  { %v36_v16 = vrot.slane %v21_v1, %v1508_v15  ;;  %v1512_v17 = vrot.slane %v29_v9, %v1508_v15  ;;  %v1515_v18 = vrot.slane %v22_v2, %v1508_v15  ;;  %v1518_v19 = vrot.slane %v46_v11, %v1508_v15  ;;  %vm1693_vm15 = vmpackc.low %vm839_vm13, %vm1449_vm14 }
   0xa   :  { %v1521_v20 = vrot.slane %v23_v12, %v1508_v15  ;;  %v1524_v21 = vrot.slane %v62_v13, %v1508_v15  ;;  %v1527_v22 = vrot.slane %v24_v8, %v1508_v15  ;;  %v1530_v23 = vrot.slane %v79_v14, %v1508_v15 }
   0xb   :  { %v1532_v24 = vcombine.high %v36_v16, %v36_v16  ;;  %v1536_v25 = vcombine.high %v1512_v17, %v1512_v17  ;;  %v1281_v26 = vrot.slane %v36_v16, 9  ;;  %v110_v27 = vrot.slane %v1512_v17, 7 }
   0xc   :  { %v116_v29 = vrot.slane %v1515_v18, 7  ;;  %v1546_v30 = vcombine.high %v1515_v18, %v1515_v18  ;;  %v77_v31 = vcombine.high %v1521_v20, %v1521_v20  ;;  %v96_v32 = vcombine.high %v1518_v19, %v1518_v19 }
   0xd   :  { %v107_v33 = vrot.slane %v1532_v24, 7  ;;  %v112_v34 = vrot.slane %v110_v27, 2  ;;  %v113_v35 = vrot.slane %v1536_v25, 7  ;;  %v122_v36 = vrot.slane %v1518_v19, 7 }
   0xe   :  { %v118_v37 = vrot.slane %v116_v29, 2  ;;  %v119_v38 = vrot.slane %v1546_v30, 7  ;;  %v125_v39 = vrot.slane %v96_v32, 7  ;;  %v1282_v40 = vrot.slane %v1521_v20, 9 }
   0xf   :  { %v108_v41 = vsel %vm1539_vm7, %v1281_v26, %v107_v33  ;;  %v109_v42 = vrot.slane %v107_v33, 2  ;;  %v114_v43 = vsel %vm1539_vm7, %v112_v34, %v113_v35  ;;  %v115_v44 = vrot.slane %v113_v35, 2 }
  0x10   :  { %v120_v45 = vsel %vm1539_vm7, %v118_v37, %v119_v38  ;;  %v121_v46 = vrot.slane %v119_v38, 2  ;;  %v124_v47 = vrot.slane %v122_v36, 2  ;;  %v129_v48 = vrot.slane %v77_v31, 7 }
  0x11   :  { %v111_v49 = vsel %vm1539_vm7, %v109_v42, %v110_v27  ;;  %v117_v50 = vsel %vm1539_vm7, %v115_v44, %v116_v29  ;;  %v308_v51 = vcombine.low %v36_v16, %v1532_v24  ;;  %v309_v52 = vcombine.low %v1512_v17, %v1536_v25  ;;  %v1294_v27 = vld [vmem:[%s1734_s1 + $0x8] sm:$0xf] }
  0x12   :  { %v151_v53 = vcombine.low %v108_v41, %v111_v49  ;;  %v152_v54 = vcombine.low %v114_v43, %v117_v50  ;;  %v123_v55 = vsel %vm1539_vm7, %v121_v46, %v122_v36  ;;  %v126_v56 = vsel %vm1539_vm7, %v124_v47, %v125_v39 }
  0x13   :  { %v130_v57 = vsel %vm1539_vm7, %v1282_v40, %v129_v48  ;;  %v168_v58 = vcombine.low %v120_v45, %v123_v55  ;;  %v316_v59 = vrot.slane %v308_v51, %v1508_v15  ;;  %v323_v60 = vrot.slane %v309_v52, %v1508_v15 }
  0x14   :  { %v159_v61 = vrot.slane %v151_v53, %v1508_v15  ;;  %v166_v62 = vrot.slane %v152_v54, %v1508_v15  ;;  %v169_v63 = vcombine.low %v126_v56, %v130_v57  ;;  %v325_v0 = vcombine.low %v1515_v18, %v1546_v30 }
  0x15   :  { %v176_v1 = vrot.slane %v168_v58, %v1508_v15  ;;  %v324_v2 = vcombine.low %v316_v59, %v323_v60  ;;  %v326_v3 = vcombine.low %v1518_v19, %v1521_v20  ;;  %v78_v5 = vcombine.high %v1524_v21, %v1524_v21 }
  0x16   :  { %v167_v6 = vcombine.low %v159_v61, %v166_v62  ;;  %v183_v7 = vrot.slane %v169_v63, %v1508_v15  ;;  %v333_v8 = vrot.slane %v325_v0, %v1508_v15  ;;  %v342_v9 = vcombine.low %v77_v31, %v1524_v21 }
  0x17   :  { %v340_v10 = vrot.slane %v326_v3, %v1508_v15  ;;  %v343_v11 = vcombine.low %v78_v5, %v1527_v22  ;;  %v94_v12 = vcombine.high %v1527_v22, %v1527_v22  ;;  %v465_v13 = vcombine.low %v1532_v24, %v1512_v17 }
  0x18   :  { %1337 = vmatprep.mubr.msk.f32.mxu0 %vm210_vm8, %v167_v6  ;;  %v184_v14 = vcombine.low %v176_v1, %v183_v7  ;;  %v466_v16 = vcombine.low %v1536_v25, %v1515_v18  ;;  %v482_v26 = vcombine.low %v1546_v30, %v1518_v19  ;;  %v350_v29 = vrot.slane %v342_v9, %v1508_v15 }
  0x19   :  { %v341_v31 = vcombine.low %v333_v8, %v340_v10  ;;  %v357_v17 = vrot.slane %v343_v11, %v1508_v15  ;;  %v359_v24 = vcombine.low %v94_v12, %v1530_v23  ;;  %v131_v32 = vrot.slane %v129_v48, 2 }
  0x1a   :  { %1338 = vmatmul.mubr.msk.f32.vlgmr.msra.gmra.mrb[0].mxu0 %vm210_vm8, %v184_v14  ;;  %v473_v18 = vrot.slane %v465_v13, %v1508_v15  ;;  %v480_v25 = vrot.slane %v466_v16, %v1508_v15  ;;  %v132_v30 = vrot.slane %v1524_v21, 7  ;;  %v135_v33 = vrot.slane %v78_v5, 7 }
  0x1b   :  { %1344 = vmatpush3.msk.msra.mxu0 %vm219_vm0, %v1494_v4  ;;  %1345 = vmatprep.mubr.msk.f32.mxu0 %vm210_vm8, %v324_v2  ;;  %v1295_v34 = vcombine.high %v1518_v19, %v1521_v20  ;;  %v490_v35 = vrot.slane %v482_v26, %v1508_v15  ;;  %v138_v36 = vrot.slane %v1527_v22, 7  ;;  %v141_v37 = vrot.slane %v94_v12, 7  ;;  %v1301_v2 = vld [vmem:[%s1735_s2] ss:$0 sm:$0xff] }
  0x1c   :  { %1351 = vmatprep.subr.msk.mxu0 %vm219_vm0, %v1294_v27  ;;  %v133_v4 = vsel %vm1539_vm7, %v131_v32, %v132_v30  ;;  %v134_v38 = vrot.slane %v132_v30, 2  ;;  %v137_v39 = vrot.slane %v135_v33, 2  ;;  %v97_v40 = vcombine.high %v1530_v23, %v1530_v23 }
  0x1d   :  { %v358_v41 = vcombine.low %v350_v29, %v357_v17  ;;  %v140_v42 = vrot.slane %v138_v36, 2  ;;  %v143_v43 = vrot.slane %v141_v37, 2  ;;  %v144_v44 = vrot.slane %v1530_v23, 7 }
  0x1e   :  { %v136_v19 = vsel %vm1539_vm7, %v134_v38, %v135_v33  ;;  %v139_v20 = vsel %vm1539_vm7, %v137_v39, %v138_v36  ;;  %v147_v45 = vrot.slane %v97_v40, 7  ;;  %v499_v46 = vcombine.low %v1524_v21, %v78_v5 }
  0x1f   :  { %v142_v47 = vsel %vm1539_vm7, %v140_v42, %v141_v37  ;;  %v185_v48 = vcombine.low %v133_v4, %v136_v19  ;;  %v145_v49 = vsel %vm1539_vm7, %v143_v43, %v144_v44  ;;  %v146_v50 = vrot.slane %v144_v44, 2 }
  0x20   :  { %v366_v51 = vrot.slane %v359_v24, %v1508_v15  ;;  %v481_v52 = vcombine.low %v473_v18, %v480_v25  ;;  %v186_v53 = vcombine.low %v139_v20, %v142_v47  ;;  %v500_v54 = vcombine.low %v1527_v22, %v94_v12 }
  0x21   :  { %v497_v55 = vrot.slane %v1295_v34, %v1508_v15  ;;  %v193_v21 = vrot.slane %v185_v48, %v1508_v15  ;;  %v148_v56 = vsel %vm1539_vm7, %v146_v50, %v147_v45  ;;  %v507_v57 = vrot.slane %v499_v46, %v1508_v15 }
  0x22   :  { %1346 = vmatmul.mubr.msk.f32.vlgmr.msra.gmra.mrb[0].mxu0 %vm210_vm8, %v341_v31  ;;  %v200_v58 = vrot.slane %v186_v53, %v1508_v15  ;;  %v202_v59 = vcombine.low %v145_v49, %v148_v56  ;;  %v514_v22 = vrot.slane %v500_v54, %v1508_v15  ;;  %v516_v28 = vcombine.low %v1530_v23, %v97_v40  ;;  %v1302_v56 = vld [vmem:[%s1736_s3] ss:$0 sm:$0xff]  ;;  %s1450_s3 = smov [#allocation2]  }
  0x23   :  { %1348 = vmatprep.mubr.msk.f32.mxu0 %vm210_vm8, %v358_v41  ;;  %1352 = vmatpush3.msk.msra.mxu0 %vm219_vm0, %v1294_v27  ;;  %v498_v62 = vcombine.low %v490_v35, %v497_v55  ;;  %v1446_v1 = vmov 0.0|0.0   ;;  %v1448_v23 = vmov 0.0   ;;  %vm835_vm0 = vcmask 113664  }
  0x24   :  { %v201_v60 = vcombine.low %v193_v21, %v200_v58  ;;  %v209_v61 = vrot.slane %v202_v59, %v1508_v15  ;;  %v515_v63 = vcombine.low %v507_v57, %v514_v22  ;;  %v523_v0 = vrot.slane %v516_v28, %v1508_v15  ;;  %1383 = vmatprep.subr.bf16.mxu1 %v1446_v1 }
  0x26   :  { %1349 = vmatmul.mubr.msk.f32.gmra.mrb[2].mxu0 %vm210_vm8, %v366_v51  ;;  %1340 = vmatprep.mubr.msk.f32.mxu1 %vm210_vm8, %v201_v60 }
  0x27   :  { %1353 = vmatprep.mubr.msk.f32.mxu0 %vm210_vm8, %v481_v52  ;;  %1341 = vmatmul.mubr.msk.f32.vlgmr.msra.gmra.mrb[0].mxu1 %vm210_vm8, %v209_v61  ;;  %v1303_v61 = vld [vmem:[%s1737_s4] ss:$0 sm:$0xff]  ;;  %s1273_s4 = sshll.u32 %s1450_s3, 4  ;;  %s1274_s4 = int_to_ptr.vmem [resolvable:$true] %s1273_s4 }
  0x28   :  { %1363 = vmatprep.mubr.msk.f32.mxu1 %vm1447_vm9, %v1448_v23  ;;  %s1421_s10 = scalar_lea.vmem %s1274_s4, 32  ;;  %p1426_p1 = scmp.lt.s32.totalorder %s1274_s4, %s1274_s4 }
  0x29   :  { %p1422_p0 = scmp.ne.s32.totalorder %s1274_s4, %s1421_s10  ;;  %p1427_p2 = scmp.lt.s32.totalorder %s1421_s10, %s1421_s10 }
  0x2a   :  { %1354 = vmatmul.mubr.msk.f32.vlgmr.msra.gmra.mrb[0].mxu0 %vm210_vm8, %v498_v62 }
  0x2b   :  { %1356 = vmatprep.mubr.msk.f32.mxu0 %vm210_vm8, %v515_v63  ;;  %p1428_p3 = por %p1427_p2, %p1426_p1 }
  0x2d   :  { %p1429_p4 = pnand %p1428_p3, %p1422_p0 }
  0x2e   :  { %1357 = vmatmul.mubr.msk.f32.gmra.mrb[2].mxu0 %vm210_vm8, %v523_v0 }
  0xfa   :  { %v1342_v3 = vpop.f32.mrb[0].mxu1 }
  0xfb   :  { %v299_v5 = vpop.f32.mrb[1].mxu1 }
  0xfd   :  { %v1355_v6 = vpop.f32.mrb[0].mxu0 }
  0xfe   :  { %v632_v7 = vadd.f32 %v1355_v6, %v1301_v2  ;;  %v601_v8 = vpop.f32.mrb[1].mxu0 }
  0xff   :  { %v631_v9 = vadd.f32 %v1301_v2, %v601_v8 }
 0x100   :  { %v637_v10 = vsel %vm635_vm10, %v632_v7, 0.0 }
 0x101   :  { %v636_v11 = vsel %vm635_vm10, %v631_v9, 0.0  ;;  %v1358_v12 = vpop.f32.mrb[2].mxu0 }
 0x102   :  { %v638_v13 = vadd.f32 %v637_v10, %v636_v11  ;;  %v1393_v14 = vadd.f32 %v1358_v12, %v1342_v3  ;;  %v611_v16 = vpop.f32.mrb[3].mxu0 }
 0x103   :  { %v1394_v26 = vadd.f32 %v611_v16, %v299_v5 }
 0x104   :  { %v634_v27 = vadd.f32 %v1393_v14, %v1301_v2 }
 0x105   :  { %v633_v29 = vadd.f32 %v1394_v26, %v1301_v2 }
 0x106   :  { %v642_v24 = vsel %vm641_vm11, %v634_v27, 0.0 }
 0x107   :  { %v639_v31 = vsel %vm635_vm10, %v633_v29, 0.0 }
 0x108   :  { %v640_v17 = vadd.f32 %v639_v31, %v638_v13 }
 0x10a   :  { %v643_v32 = vadd.f32 %v642_v24, %v640_v17 }
 0x10c   :  { %v644_v18 = vrot.slane %v643_v32, 4 }
 0x10e   :  { %v645_v25 = vadd.f32 %v644_v18, %v643_v32 }
 0x110   :  { %v646_v30 = vrot.slane %v645_v25, 2 }
 0x112   :  { %v647_v33 = vadd.f32 %v646_v30, %v645_v25 }
 0x114   :  { %v648_v34 = vrot.slane %v647_v33, 1 }
 0x116   :  { %v649_v35 = vadd.f32 %v648_v34, %v647_v33 }
 0x118   :  { %v650_v36 = vmul.f32 0.035714287, %v649_v35 }
 0x11a   :  { %v651_v37 = vsub.f32 %v631_v9, %v650_v36  ;;  %v652_v4 = vsub.f32 %v632_v7, %v650_v36  ;;  %v653_v38 = vsub.f32 %v633_v29, %v650_v36  ;;  %v654_v39 = vsub.f32 %v634_v27, %v650_v36 }
 0x11c   :  { %v655_v40 = vmul.f32 %v651_v37, %v651_v37  ;;  %v656_v41 = vmul.f32 %v652_v4, %v652_v4  ;;  %v657_v42 = vmul.f32 %v653_v38, %v653_v38  ;;  %v658_v43 = vmul.f32 %v654_v39, %v654_v39 }
 0x11d   :  { %v680_v57 = vmul.f32 %v1302_v56, %v651_v37  ;;  %v681_v58 = vmul.f32 %v1302_v56, %v652_v4  ;;  %v682_v59 = vmul.f32 %v1302_v56, %v653_v38  ;;  %v683_v22 = vmul.f32 %v1302_v56, %v654_v39 }
 0x11e   :  { %v659_v44 = vsel %vm635_vm10, %v655_v40, 0.0  ;;  %v660_v19 = vsel %vm635_vm10, %v656_v41, 0.0  ;;  %v662_v45 = vsel %vm635_vm10, %v657_v42, 0.0  ;;  %v664_v47 = vsel %vm641_vm11, %v658_v43, 0.0 }
 0x11f   :  { %v661_v20 = vadd.f32 %v660_v19, %v659_v44 }
 0x121   :  { %v663_v46 = vadd.f32 %v662_v45, %v661_v20 }
 0x123   :  { %v665_v48 = vadd.f32 %v664_v47, %v663_v46 }
 0x125   :  { %v666_v49 = vrot.slane %v665_v48, 4 }
 0x127   :  { %v667_v50 = vadd.f32 %v666_v49, %v665_v48 }
 0x129   :  { %v668_v51 = vrot.slane %v667_v50, 2 }
 0x12b   :  { %v669_v52 = vadd.f32 %v668_v51, %v667_v50 }
 0x12d   :  { %v670_v53 = vrot.slane %v669_v52, 1 }
 0x12f   :  { %v671_v54 = vadd.f32 %v670_v53, %v669_v52 }
 0x131   :  { %v672_v55 = vmul.f32 0.035714287, %v671_v54 }
 0x133   :  { %v684_v21 = vadd.f32 1e-05, %v672_v55 }
 0x135   :  { %1411 = vrsqrt.f32 %v684_v21 }
 0x13f   :  { %v1412_v60 = vpop.eup %1411 }
 0x140   :  { %v687_v62 = vmul.f32 %v1412_v60, %v681_v58  ;;  %v688_v28 = vmul.f32 %v1412_v60, %v682_v59  ;;  %v686_v63 = vmul.f32 %v1412_v60, %v680_v57  ;;  %v689_v0 = vmul.f32 %v1412_v60, %v683_v22 }
 0x142   :  { %v699_v2 = vadd.f32 %v1303_v61, %v688_v28  ;;  %v698_v3 = vadd.f32 %v1303_v61, %v687_v62  ;;  %v697_v5 = vadd.f32 %v1303_v61, %v686_v63  ;;  %v700_v6 = vadd.f32 %v1303_v61, %v689_v0 }
 0x144   :  { %v703_v7 = vmax.f32 %v699_v2, 0.0  ;;  %v702_v8 = vmax.f32 %v698_v3, 0.0  ;;  %v701_v9 = vmax.f32 %v697_v5, 0.0  ;;  %v704_v10 = vmax.f32 %v700_v6, 0.0 }
 0x146   :  { %v726_v11 = vcombine.high %v702_v8, %v702_v8  ;;  %v733_v12 = vrot.slane %v702_v8, %v1508_v15  ;;  %v743_v13 = vcombine.high %v703_v7, %v703_v7  ;;  %v750_v14 = vrot.slane %v703_v7, %v1508_v15 }
 0x147   :  { %v709_v16 = vcombine.high %v701_v9, %v701_v9  ;;  %v716_v26 = vrot.slane %v701_v9, %v1508_v15  ;;  %v766_v27 = vrot.slane %v704_v10, %v1508_v15 }
 0x148   :  { %v740_v29 = vrot.slane %v726_v11, %v1508_v15  ;;  %v757_v31 = vrot.slane %v743_v13, %v1508_v15  ;;  %v758_v17 = vcombine.high %v750_v14, %v750_v14  ;;  %v741_v24 = vcombine.high %v733_v12, %v733_v12 }
 0x149   :  { %v723_v32 = vrot.slane %v709_v16, %v1508_v15  ;;  %v724_v18 = vcombine.high %v716_v26, %v716_v26  ;;  %v767_v37 = vcombine.high %v766_v27, %v766_v27 }
 0x14a   :  { %v742_v25 = vcombine.high %v740_v29, %v740_v29  ;;  %v1017_v30 = vcombine.low %v758_v17, %v757_v31  ;;  %v785_v33 = vcombine.low %v733_v12, %v741_v24  ;;  %v759_v36 = vcombine.high %v757_v31, %v757_v31 }
 0x14b   :  { %v725_v34 = vcombine.high %v723_v32, %v723_v32  ;;  %v768_v35 = vcombine.low %v716_v26, %v724_v18  ;;  %v799_v4 = vrot.slane %v740_v29, %v1508_v15  ;;  %v1047_v46 = vrot.slane %v767_v37, %v1508_v15 }
 0x14c   :  { %v1016_v38 = vcombine.low %v742_v25, %v750_v14  ;;  %v792_v39 = vrot.slane %v785_v33, %v1508_v15  ;;  %v1033_v41 = vcombine.low %v759_v36, %v766_v27  ;;  %v1031_v43 = vrot.slane %v1017_v30, %v1508_v15 }
 0x14d   :  { %v769_v40 = vcombine.low %v723_v32, %v725_v34  ;;  %v776_v19 = vrot.slane %v768_v35, %v1508_v15 }
 0x14e   :  { %v1024_v42 = vrot.slane %v1016_v38, %v1508_v15  ;;  %v800_v44 = vcombine.low %v792_v39, %v799_v4  ;;  %v1040_v45 = vrot.slane %v1033_v41, %v1508_v15 }
 0x14f   :  { %v783_v20 = vrot.slane %v769_v40, %v1508_v15 }
 0x150   :  { %v1032_v47 = vcombine.low %v1024_v42, %v1031_v43  ;;  %v1048_v49 = vcombine.low %v1040_v45, %v1047_v46  ;;  %v932_v51 = vsel %vm931_vm12, %v800_v44, 0.0 }
 0x151   :  { %v784_v48 = vcombine.low %v776_v19, %v783_v20 }
 0x152   :  { %1051 = vxpose.xlu1.b32.start [1/2] (short) (narrow) %v1032_v47, 8  ;;  %v1176_v50 = vsel %vm635_vm10, %v1032_v47, 0.0  ;;  %v1177_v15 = vsel %vm931_vm12, %v1048_v49, 0.0  ;;  %v1388_v55 = vpack.c.bf16 %v1048_v49, %v1032_v47 }
 0x153   :  { %803 = vxpose.xlu0.b32.start [1/2] (short) (narrow) %v784_v48, 8  ;;  %v1384_v53 = vpack.c.bf16 %v800_v44, %v784_v48  ;;  %v930_v54 = vsel %vm635_vm10, %v784_v48, 0.0  ;;  %v1178_v56 = vadd.f32 %v1177_v15, %v1176_v50 }
 0x154   :  { %v933_v21 = vadd.f32 %v932_v51, %v930_v54 }
 0x155   :  { %1386 = vmatpush3.bf16.msk.msra.mxu1 %vm1693_vm15, %v1384_v53 }
 0x156   :  { %1052 = vxpose.xlu1.b32.end [2/2] (short) (narrow) %v1048_v49, 8  ;;  %1366 = vmatprep.subr.mxu1 %v1448_v23  ;;  %v934_v62 = vrot.slane %v933_v21, 4 }
 0x157   :  { %804 = vxpose.xlu0.b32.end [2/2] (short) (narrow) %v800_v44, 8 }
 0x158   :  { %v935_v0 = vadd.f32 %v934_v62, %v933_v21 }
 0x15a   :  { %v936_v5 = vrot.slane %v935_v0, 2 }
 0x15c   :  { %v937_v8 = vadd.f32 %v936_v5, %v935_v0 }
 0x15e   :  { %v938_v10 = vrot.slane %v937_v8, 1 }
 0x160   :  { %v939_v11 = vadd.f32 %v938_v10, %v937_v8 }
 0x162   :  { %v940_v13 = vmul.f32 0.071428575, %v939_v11 }
 0x1d2   :  { %v1067_v14 = vpop.trf.xlu1 }
 0x1d3   :  { %v819_v57 = vpop.trf.xlu0 }
 0x1d4   :  { %1364 = vmatmul.mubr.msk.f32.vlgmr.msra.gmra.mrb[2].mxu1 %vm835_vm0, %v819_v57 }
 0x1d5   :  { %1368 = vmatprep.mubr.msk.f32.mxu1 %vm1447_vm9, %v1448_v23 }
 0x2a7   :  { %v908_v58 = vpop.f32.mrb[2].mxu1 }
 0x2a8   :  { %v912_v59 = vmul.f32 0.26726124, %v908_v58  ;;  %v1365_v22 = vpop.f32.mrb[3].mxu1 }
 0x2aa   :  { %v913_v60 = vsel %vm635_vm10, %v912_v59, -inf }
 0x2ab   :  { %v914_v61 = vrot.slane %v913_v60, 4 }
 0x2ad   :  { %v915_v28 = vmax.f32 %v913_v60, %v914_v61 }
 0x2af   :  { %v916_v63 = vrot.slane %v915_v28, 2 }
 0x2b1   :  { %v917_v2 = vmax.f32 %v915_v28, %v916_v63 }
 0x2b3   :  { %v918_v3 = vrot.slane %v917_v2, 1 }
 0x2b5   :  { %v919_v6 = vmax.f32 %v917_v2, %v918_v3 }
 0x2b7   :  { %v920_v7 = vsub.f32 %v912_v59, %v919_v6 }
 0x2b9   :  { %v921_v9 = vmul.f32 1.442695, %v920_v7 }
 0x2bb   :  { %1413 = vpow2.f32 %v921_v9 }
 0x2c5   :  { %v1414_v12 = vpop.eup %1413 }
 0x2c6   :  { %1367 = vmatpush3.msra.mxu1 %v1414_v12  ;;  %v923_v16 = vsel %vm635_vm10, %v1414_v12, 0.0 }
 0x2c7   :  { %1369 = vmatmul.mubr.msk.f32.vlgmr.msra.gmra.mrb[4].mxu1 %vm635_vm10, %v940_v13  ;;  %1387 = vmatprep.subr.bf16.mxu1 %v1446_v1  ;;  %v924_v26 = vrot.slane %v923_v16, 4 }
 0x2c8   :  { %1390 = vmatpush3.bf16.msk.msra.mxu1 %vm1693_vm15, %v1388_v55  ;;  %1375 = vmatprep.mubr.msk.f32.mxu1 %vm1447_vm9, %v1448_v23 }
 0x2c9   :  { %1378 = vmatprep.subr.mxu1 %v1448_v23  ;;  %v925_v27 = vadd.f32 %v924_v26, %v923_v16 }
 0x2cb   :  { %1376 = vmatmul.mubr.msk.f32.vlgmr.msra.gmra.mrb[6].mxu1 %vm835_vm0, %v1067_v14  ;;  %v926_v29 = vrot.slane %v925_v27, 2 }
 0x2cc   :  { %1380 = vmatprep.mubr.msk.f32.mxu1 %vm1447_vm9, %v1448_v23  ;;  %v1179_v23 = vrot.slane %v1178_v56, 4 }
 0x2cd   :  { %v927_v1 = vadd.f32 %v926_v29, %v925_v27 }
 0x2ce   :  { %v1180_v38 = vadd.f32 %v1179_v23, %v1178_v56 }
 0x2cf   :  { %v928_v31 = vrot.slane %v927_v1, 1 }
 0x2d0   :  { %v1181_v41 = vrot.slane %v1180_v38, 2 }
 0x2d1   :  { %v929_v17 = vadd.f32 %v928_v31, %v927_v1 }
 0x2d2   :  { %v1182_v44 = vadd.f32 %v1181_v41, %v1180_v38 }
 0x2d3   :  { %1415 = vrcp.f32 %v929_v17 }
 0x2d4   :  { %v1183_v20 = vrot.slane %v1182_v44, 1 }
 0x2d6   :  { %v1184_v45 = vadd.f32 %v1183_v20, %v1182_v44 }
 0x2d8   :  { %v1185_v47 = vmul.f32 0.071428575, %v1184_v45 }
 0x2dd   :  { %v1416_v24 = vpop.eup %1415 }
 0x39a   :  { %v1010_v32 = vpop.f32.mrb[4].mxu1 }
 0x39b   :  { %v1015_v18 = vmul.f32 %v1416_v24, %v1010_v32  ;;  %v1370_v25 = vpop.f32.mrb[5].mxu1 }
 0x39e   :  { %v1154_v30 = vpop.f32.mrb[6].mxu1 }
 0x39f   :  { %v1158_v33 = vmul.f32 0.26726124, %v1154_v30  ;;  %v1377_v34 = vpop.f32.mrb[7].mxu1 }
 0x3a1   :  { %v1159_v35 = vsel %vm635_vm10, %v1158_v33, -inf }
 0x3a2   :  { %v1160_v36 = vrot.slane %v1159_v35, 4 }
 0x3a4   :  { %v1161_v37 = vmax.f32 %v1159_v35, %v1160_v36 }
 0x3a6   :  { %v1162_v4 = vrot.slane %v1161_v37, 2 }
 0x3a8   :  { %v1163_v39 = vmax.f32 %v1161_v37, %v1162_v4 }
 0x3aa   :  { %v1164_v40 = vrot.slane %v1163_v39, 1 }
 0x3ac   :  { %v1165_v42 = vmax.f32 %v1163_v39, %v1164_v40 }
 0x3ae   :  { %v1166_v43 = vsub.f32 %v1158_v33, %v1165_v42 }
 0x3b0   :  { %v1167_v19 = vmul.f32 1.442695, %v1166_v43 }
 0x3b2   :  { %1417 = vpow2.f32 %v1167_v19 }
 0x3bc   :  { %v1418_v46 = vpop.eup %1417 }
 0x3bd   :  { %1379 = vmatpush3.msra.mxu1 %v1418_v46  ;;  %v1169_v48 = vsel %vm635_vm10, %v1418_v46, 0.0 }
 0x3be   :  { %1381 = vmatmul.mubr.msk.f32.vlgmr.msra.gmra.mrb[8].mxu1 %vm635_vm10, %v1185_v47  ;;  %v1170_v49 = vrot.slane %v1169_v48, 4 }
 0x3c0   :  { %v1171_v50 = vadd.f32 %v1170_v49, %v1169_v48 }
 0x3c2   :  { %v1172_v51 = vrot.slane %v1171_v50, 2 }
 0x3c4   :  { %v1173_v52 = vadd.f32 %v1172_v51, %v1171_v50 }
 0x3c6   :  { %v1174_v53 = vrot.slane %v1173_v52, 1 }
 0x3c8   :  { %v1175_v54 = vadd.f32 %v1174_v53, %v1173_v52 }
 0x3ca   :  { %1419 = vrcp.f32 %v1175_v54 }
 0x3d4   :  { %v1420_v15 = vpop.eup %1419 }
 0x491   :  { %v1255_v55 = vpop.f32.mrb[8].mxu1 }
 0x492   :  { %v1260_v21 = vmul.f32 %v1420_v15, %v1255_v55  ;;  %v1382_v56 = vpop.f32.mrb[9].mxu1 }
 0x494   :  { %v1262_v57 = vrot.slane %v1260_v21, 7 }
 0x496   :  { %v1264_v58 = vsel %vm98_vm1, %v1015_v18, %v1262_v57 }
 0x497   :  { %1266 = vst.msk [vmem:[#allocation2] sm:$0x3] %vm1265_vm2, %v1264_v58 }
 0x498   :  { %1432 = shalt.err (!%p1429_p4)
}
 0x499   :  { %s1433_s13 = scalar_lea.hbm %s1738_s5, 32 }
 0x49a   :  { %p1434_p5 = scmp.ne.s32.totalorder %s1738_s5, %s1433_s13  ;;  %p1437_p6 = scmp.lt.u32.totalorder %s1433_s13, %s1738_s5 }
 0x49c   :  { %p1439_p7 = pnand %p1437_p6, %p1434_p5 }
 0x49e   :  { %1442 = shalt.err (!%p1439_p7)
}
 0x49f   :  { %1276 = dma.vmem_to_hbm [thread:$0]  %s1274_s4, 32, %s1738_s5, [#allocation3]  }
 0x4a0   :  { %1443 = dma.done.wait [#allocation3], 32  }
 0x4a1   :  { %1444 = vsyncadd [#allocation3], 4294967264 }
 0x4a2   :  { %1280 = vsyncpa [#allocation3], 1 }

</bundles_post_ra>
